<compile_context>
chip_gen: v7x
topology: tpu7x:2x2x1
jax: 0.10.0
libtpu: 0.0.40
codegen_flags: <defaults>
</compile_context>

<pallas_src>
import jax
import jax.numpy as jnp
from jax.experimental import pallas as pl
from jax.experimental.pallas import tpu as pltpu


def _copy_kernel(r_ref, o_ref):
    # Pure pass-through of relevance values (the reshape itself is a view).
    o_ref[...] = r_ref[...]


def _choose_2d_layout(total: int, itemsize: int):
    """Pick a lane-dense (rows, lane) view of `total` elements and a row tile.

    lane: multiple of 128 dividing `total` (capped so tiles stay reasonably
          square), preferring choices that leave rows >= 8 (full sublane use).
    block_rows: multiple of 8 sized so one tile is ~2 MiB (4 buffers fit the
          default scoped-VMEM limit on every generation), clipped to rows.
    """
    lane_cap = 4096
    divisors = [m for m in range(128, min(total, lane_cap) + 1, 128)
                if total % m == 0]
    if not divisors:
        # Degenerate / non-128-divisible sizes: single full-extent block
        # (allowed by the (8,128) rule when the block equals the array dims).
        return 1, total, 1
    with_rows = [m for m in divisors if total // m >= 8]
    lane = max(with_rows) if with_rows else max(divisors)
    rows = total // lane

    target_tile_bytes = 2 * 1024 * 1024
    br = max(8, (target_tile_bytes // (lane * itemsize)) // 8 * 8)
    block_rows = min(rows, br)
    return rows, lane, block_rows


def relevance_propagation_flatten(a: jax.Array, r: jax.Array) -> jax.Array:
    """LRP for a Flatten layer: return r viewed with a's shape.

    a: (N, C, H, W)  activations entering the flatten layer (only shape used)
    r: (N, C*H*W)    relevance leaving the flatten layer (same element count)
    returns: r reshaped to a.shape, same dtype as r.
    """
    total = 1
    for s in a.shape:
        total *= s
    itemsize = jnp.dtype(r.dtype).itemsize

    rows, lane, block_rows = _choose_2d_layout(total, itemsize)

    # Metadata-only reshape to the lane-dense slab the kernel operates on.
    r2d = r.reshape(rows, lane)

    out2d = pl.pallas_call(
        _copy_kernel,
        out_shape=jax.ShapeDtypeStruct((rows, lane), r.dtype),
        grid=(pl.cdiv(rows, block_rows),),
        in_specs=[pl.BlockSpec((block_rows, lane), lambda i: (i, 0))],
        out_specs=pl.BlockSpec((block_rows, lane), lambda i: (i, 0)),
        # The "copy" aliases the input buffer: no second HBM allocation.
        input_output_aliases={0: 0},
        compiler_params=pltpu.CompilerParams(
            dimension_semantics=("parallel",),
        ),
        cost_estimate=pl.CostEstimate(
            flops=0,
            transcendentals=0,
            bytes_accessed=2 * total * itemsize,
        ),
    )(r2d)

    # Final reshape to a.shape is a free view, matching r.view(size=a.shape).
    return out2d.reshape(a.shape)


if __name__ == "__main__":
    key = jax.random.PRNGKey(0)
    ka, kr = jax.random.split(key)

    # Small shapes consistent with the module's forward semantics.
    N, C, H, W = 2, 4, 16, 16
    a = jax.random.normal(ka, (N, C, H, W), dtype=jnp.float32)
    r = jax.random.normal(kr, (N, C * H * W), dtype=jnp.float32)

    # Reference (exactly what torch's r.view(size=a.shape) produces), computed
    # up-front so the aliasing/donation inside the kernel can't interfere.
    ref = jax.block_until_ready(jnp.reshape(r, a.shape))

    fwd = jax.jit(relevance_propagation_flatten)
    out = fwd(a, r)
    out = jax.block_until_ready(out)

    assert out.shape == a.shape
    assert out.dtype == r.dtype
    assert bool(jnp.array_equal(out, ref))

    print("KERNEL_OK")
</pallas_src>

<mosaic_0001>
module attributes {stable_mosaic.version = 11 : i64} {
  func.func @_copy_kernel(%arg0: i32, %arg1: memref<8x256xf32, #tpu.memory_space<vmem>>, %arg2: memref<8x256xf32, #tpu.memory_space<vmem>>) attributes {dimension_semantics = [#tpu.dimension_semantics<parallel>], iteration_bounds = array<i64: 1>, scalar_prefetch = 0 : i64, scratch_operands = 0 : i64, tpu.core_type = #tpu.core_type<tc>, window_params = [{transform_indices = @transform_0, window_bounds = array<i64: 8, 256>}, {transform_indices = @transform_1, window_bounds = array<i64: 8, 256>}]} {
    %c0 = arith.constant 0 : index
    %c0_0 = arith.constant 0 : index
    %0 = vector.load %arg1[%c0, %c0_0] : memref<8x256xf32, #tpu.memory_space<vmem>>, vector<8x256xf32>
    %c0_1 = arith.constant 0 : index
    %c0_2 = arith.constant 0 : index
    %1 = vector.load %arg2[%c0_1, %c0_2] : memref<8x256xf32, #tpu.memory_space<vmem>>, vector<8x256xf32>
    tpu.vector_store %arg2[%c0_1, %c0_2], %0 {strides = array<i32>} : memref<8x256xf32, #tpu.memory_space<vmem>>, vector<8x256xf32>,
    return
  }
  func.func @transform_0(%arg0: i32) -> (i32, i32) {
    %c0_i32 = arith.constant 0 : i32
    %c0_i32_0 = arith.constant 0 : i32
    return %arg0, %c0_i32 : i32, i32
  }
  func.func @transform_1(%arg0: i32) -> (i32, i32) {
    %c0_i32 = arith.constant 0 : i32
    %c0_i32_0 = arith.constant 0 : i32
    return %arg0, %c0_i32 : i32, i32
  }
}

</mosaic_0001>

<bundles_post_ra>
// kernel: relevance_propagation_flatten.1
= control target key start
LH: loop header
LB: loop body
LE: loop exit
PB: predicated region body
PF: predicated region fallthrough
CT: control target
= control target key end

     0   :  { %s38_s0 = inlined_call_operand.vmem [shape: f32[8,256], index: 0, kind: input, shape index: {}, may-alias: {0,1}]   ;;  %s39_s1 = inlined_call_operand.vmem [shape: f32[8,256], index: 1, kind: output, shape index: {}, may-alias: {0,1}]  }
   0x1   :  { %v8_v0 = vld [vmem:[%s38_s0] sm:$0xff]  ;;  %v9_v1 = vld [vmem:[%s38_s0 + $0x8] sm:$0xff] }
   0x2   :  { %10 = vst [vmem:[%s39_s1] sm:$0xff] %v8_v0  ;;  %11 = vst [vmem:[%s39_s1 + $0x8] sm:$0xff] %v9_v1 }

</bundles_post_ra>
